<compile_context>
chip_gen: v7x
topology: tpu7x:2x2x1
jax: 0.10.0
libtpu: 0.0.40
codegen_flags: <defaults>
</compile_context>

<pallas_src>
import functools

import jax
import jax.numpy as jnp
from jax.experimental import pallas as pl
from jax.experimental.pallas import tpu as pltpu


def _round_up(x, m):
    return (x + m - 1) // m * m


def make_gcn_kernel(n, hidden, num_classes, kp):
    """kp = 16-row-aligned padded height of the [X@W1; b1] block in `params`."""

    def gcn_kernel(a_aug_ref, params_ref, out_ref):
        a_aug = a_aug_ref[...]                                   # (N, Kp) bf16
        # ---- layer 1: relu(Â @ (X W1) + b1), bias folded via the ones column.
        w1_aug = params_ref[0:kp, 0:hidden]                      # (Kp, H) bf16
        h = jnp.dot(a_aug, w1_aug,
                    preferred_element_type=jnp.float32)          # (N, H) f32
        h = jnp.maximum(h, 0.0)                                  # relu in f32
        # ---- layer 2: Â @ (H @ W2) + b2 (narrow-dim contraction first).
        w2 = params_ref[kp:kp + hidden, 0:num_classes]           # (H, C) bf16
        hw = jnp.dot(h.astype(w2.dtype), w2,
                     preferred_element_type=jnp.float32)         # (N, C) f32
        out = jnp.dot(a_aug[:, :n], hw.astype(a_aug.dtype),
                      preferred_element_type=jnp.float32)        # (N, C) f32
        b2 = params_ref[kp + hidden:kp + hidden + 1,
                        0:num_classes].astype(jnp.float32)       # (1, C) f32
        out_ref[...] = out + b2                                  # f32 add

    return gcn_kernel


def prepare_gcn_operands(a_hat, x, w1, b1, w2, b2, *, x_is_identity=False,
                         compute_dtype=jnp.bfloat16):
    """One-time operand prep (hoisted out of the per-call hot path).

    Returns (a_aug, params_blob) already in compute_dtype and padded/packed for
    the kernel, plus the static geometry needed by gcn_forward_prepared.
    """
    n = a_hat.shape[0]
    in_feats, hidden = w1.shape
    num_classes = w2.shape[1]

    if x_is_identity:
        # Guard: the fold X@W1 == W1 is only valid for a square identity X.
        assert x.shape == (n, in_feats) and n == in_feats, (
            "x_is_identity requires X == eye(N) with N == in_feats")
        assert bool(jnp.all(x == jnp.eye(n, dtype=x.dtype))), (
            "x_is_identity=True but X is not the identity")
        xw1 = w1
    else:
        xw1 = jnp.dot(x, w1)                                     # (N, H)

    kp = _round_up(n + 1, 16)                      # bf16 sublane alignment
    rows_total = _round_up(kp + hidden + 1, 16)
    lanes = max(hidden, num_classes)

    # a_aug = [Â | 1 | zero-pad]  -> (N, Kp)
    a_aug = jnp.zeros((n, kp), compute_dtype)
    a_aug = a_aug.at[:, :n].set(a_hat.astype(compute_dtype))
    a_aug = a_aug.at[:, n].set(jnp.ones((n,), compute_dtype))

    # Single packed parameter blob -> (rows_total, lanes)
    blob = jnp.zeros((rows_total, lanes), compute_dtype)
    blob = blob.at[:n, :hidden].set(xw1.astype(compute_dtype))
    blob = blob.at[n, :hidden].set(b1.astype(compute_dtype))
    blob = blob.at[kp:kp + hidden, :num_classes].set(w2.astype(compute_dtype))
    blob = blob.at[kp + hidden, :num_classes].set(b2.astype(compute_dtype))

    geom = dict(n=n, hidden=hidden, num_classes=num_classes, kp=kp)
    return jax.block_until_ready(a_aug), jax.block_until_ready(blob), geom


@functools.partial(jax.jit, static_argnames=("n", "hidden", "num_classes", "kp"))
def gcn_forward_prepared(a_aug, params, *, n, hidden, num_classes, kp):
    """Hot path: a single pallas_call, no wrapper-side prep ops."""
    vmem = pl.BlockSpec(memory_space=pltpu.MemorySpace.VMEM)
    return pl.pallas_call(
        make_gcn_kernel(n, hidden, num_classes, kp),
        out_shape=jax.ShapeDtypeStruct((n, num_classes), jnp.float32),
        in_specs=[vmem, vmem],
        out_specs=vmem,
    )(a_aug, params)


def gcn_forward(a_hat, x, w1, b1, w2, b2, *, x_is_identity=False,
                compute_dtype=jnp.bfloat16):
    """Convenience one-shot wrapper (prep + call). Prefer prepare + prepared
    when the forward is invoked more than once."""
    a_aug, blob, geom = prepare_gcn_operands(
        a_hat, x, w1, b1, w2, b2, x_is_identity=x_is_identity,
        compute_dtype=compute_dtype)
    return gcn_forward_prepared(a_aug, blob, **geom)


def build_normalized_adjacency(key, n):
    # Deterministic synthetic undirected graph + self loops, symmetric norm.
    probs = jax.random.uniform(key, (n, n))
    upper = jnp.triu(probs < 0.15, k=1).astype(jnp.float32)
    adj = upper + upper.T + jnp.eye(n, dtype=jnp.float32)        # add self loops
    deg = jnp.sum(adj, axis=1)
    d_inv_sqrt = 1.0 / jnp.sqrt(deg)
    return adj * d_inv_sqrt[:, None] * d_inv_sqrt[None, :]       # D^-1/2 A D^-1/2


if __name__ == "__main__":
    # Shapes implied by the module: inputs = torch.eye(34) -> N = in_feats = 34.
    N = 34
    IN_FEATS = 34
    HIDDEN = 16
    NUM_CLASSES = 4

    key = jax.random.PRNGKey(0)
    k_adj, k_w1, k_w2, k_b1, k_b2 = jax.random.split(key, 5)

    a_hat = build_normalized_adjacency(k_adj, N)                 # (N, N)
    x = jnp.eye(N, IN_FEATS, dtype=jnp.float32)                  # torch.eye(34)

    # Deterministic Glorot-uniform weights (GraphConv default). Small nonzero
    # biases so the bias-folding path is actually exercised.
    def glorot(k, fan_in, fan_out):
        limit = jnp.sqrt(6.0 / (fan_in + fan_out))
        return jax.random.uniform(k, (fan_in, fan_out), jnp.float32, -limit, limit)

    w1 = glorot(k_w1, IN_FEATS, HIDDEN)
    b1 = 0.1 * jax.random.normal(k_b1, (HIDDEN,), jnp.float32)
    w2 = glorot(k_w2, HIDDEN, NUM_CLASSES)
    b2 = 0.1 * jax.random.normal(k_b2, (NUM_CLASSES,), jnp.float32)

    # One-time prep (hoisted out of the hot path), then the bare kernel call.
    a_aug, blob, geom = prepare_gcn_operands(
        a_hat, x, w1, b1, w2, b2, x_is_identity=True)
    out = gcn_forward_prepared(a_aug, blob, **geom)
    out = jax.block_until_ready(out)
    assert out.shape == (N, NUM_CLASSES)

    # --- Tight check: same math with the same bf16-quantized operands -------
    cd = jnp.bfloat16
    a_q = a_hat.astype(cd).astype(jnp.float32)
    w1_q = w1.astype(cd).astype(jnp.float32)
    b1_q = b1.astype(cd).astype(jnp.float32)
    w2_q = w2.astype(cd).astype(jnp.float32)
    b2_q = b2.astype(cd).astype(jnp.float32)
    h_ref = jnp.maximum(a_q @ w1_q + b1_q[None, :], 0.0)         # X = I
    hw_ref = h_ref.astype(cd).astype(jnp.float32) @ w2_q
    ref_tight = a_q @ hw_ref.astype(cd).astype(jnp.float32) + b2_q[None, :]
    assert jnp.allclose(out, ref_tight, atol=1e-3, rtol=1e-3)

    # --- Loose check: full-f32 reference of the original (unfolded) math ----
    ref_full = (a_hat @ jnp.maximum(a_hat @ x @ w1 + b1[None, :], 0.0) @ w2
                + b2[None, :])
    assert jnp.allclose(out, ref_full, atol=5e-2, rtol=5e-2)

    print("KERNEL_OK")
</pallas_src>

<mosaic_0001>
module attributes {stable_mosaic.version = 11 : i64} {
  func.func @gcn_kernel(%arg0: memref<34x48xbf16, #tpu.memory_space<vmem>>, %arg1: memref<80x16xbf16, #tpu.memory_space<vmem>>, %arg2: memref<34x4xf32, #tpu.memory_space<vmem>>) attributes {dimension_semantics = [], scalar_prefetch = 0 : i64, scratch_operands = 0 : i64, tpu.core_type = #tpu.core_type<tc>} {
    %c0 = arith.constant 0 : index
    %c0_0 = arith.constant 0 : index
    %0 = vector.load %arg0[%c0, %c0_0] : memref<34x48xbf16, #tpu.memory_space<vmem>>, vector<34x48xbf16>
    %c0_1 = arith.constant 0 : index
    %c0_2 = arith.constant 0 : index
    %1 = vector.load %arg1[%c0_1, %c0_2] : memref<80x16xbf16, #tpu.memory_space<vmem>>, vector<48x16xbf16>
    %cst = arith.constant dense<0.000000e+00> : vector<34x16xf32>
    %2 = tpu.matmul %0, %1, %cst {dimension_numbers = #tpu.dot_dimension_numbers<[1], [0], [0], [1], [0, 0, 1, 1], [], []>} : vector<34x48xbf16>, vector<48x16xbf16>, vector<34x16xf32> -> vector<34x16xf32>
    %cst_3 = arith.constant 0.000000e+00 : f32
    %3 = vector.broadcast %cst_3 : f32 to vector<34x16xf32>
    %4 = arith.maximumf %2, %3 : vector<34x16xf32>
    %c48 = arith.constant 48 : index
    %c0_4 = arith.constant 0 : index
    %5 = vector.load %arg1[%c48, %c0_4] : memref<80x16xbf16, #tpu.memory_space<vmem>>, vector<16x4xbf16>
    %6 = arith.truncf %4 : vector<34x16xf32> to vector<34x16xbf16>
    %cst_5 = arith.constant dense<0.000000e+00> : vector<34x4xf32>
    %7 = tpu.matmul %6, %5, %cst_5 {dimension_numbers = #tpu.dot_dimension_numbers<[1], [0], [0], [1], [0, 0, 1, 1], [], []>} : vector<34x16xbf16>, vector<16x4xbf16>, vector<34x4xf32> -> vector<34x4xf32>
    %8 = vector.extract_strided_slice %0 {offsets = [0, 0], sizes = [34, 34], strides = [1, 1]} : vector<34x48xbf16> to vector<34x34xbf16>
    %9 = arith.truncf %7 : vector<34x4xf32> to vector<34x4xbf16>
    %cst_6 = arith.constant dense<0.000000e+00> : vector<34x4xf32>
    %10 = tpu.matmul %8, %9, %cst_6 {dimension_numbers = #tpu.dot_dimension_numbers<[1], [0], [0], [1], [0, 0, 1, 1], [], []>} : vector<34x34xbf16>, vector<34x4xbf16>, vector<34x4xf32> -> vector<34x4xf32>
    %c64 = arith.constant 64 : index
    %c0_7 = arith.constant 0 : index
    %11 = vector.load %arg1[%c64, %c0_7] : memref<80x16xbf16, #tpu.memory_space<vmem>>, vector<1x4xbf16>
    %12 = arith.extf %11 : vector<1x4xbf16> to vector<1x4xf32>
    %13 = vector.broadcast %12 : vector<1x4xf32> to vector<34x4xf32>
    %14 = arith.addf %10, %13 : vector<34x4xf32>
    %c0_8 = arith.constant 0 : index
    %c0_9 = arith.constant 0 : index
    %15 = vector.load %arg2[%c0_8, %c0_9] : memref<34x4xf32, #tpu.memory_space<vmem>>, vector<34x4xf32>
    tpu.vector_store %arg2[%c0_8, %c0_9], %14 {strides = array<i32>} : memref<34x4xf32, #tpu.memory_space<vmem>>, vector<34x4xf32>,
    return
  }
}

</mosaic_0001>

<bundles_post_ra>
// kernel: gcn_forward_prepared.1
= control target key start
LH: loop header
LB: loop body
LE: loop exit
PB: predicated region body
PF: predicated region fallthrough
CT: control target
= control target key end

     0   :  { %v382_v0 = vmov 0.0   ;;  %vm383_vm0 = vmmov 0   ;;  %vm54_vm1 = vcmask 392192   ;;  %vm136_vm2 = vcmask 130048   ;;  %s467_s1 = inlined_call_operand.vmem [shape: bf16[80,16], index: 1, kind: input, shape index: {}]   ;;  %s468_s0 = inlined_call_operand.vmem [shape: bf16[34,48], index: 0, kind: input, shape index: {}]   ;;  %s469_s2 = inlined_call_operand.vmem [shape: f32[34,4], index: 2, kind: output, shape index: {}]  }
   0x1   :  { %321 = vmatprep.subr.bf16.mxu0 %v382_v0  ;;  %v375_v1 = vld [vmem:[%s467_s1] sm:$0xff]   ;;  %327 = vmatprep.mubr.msk.bf16.mxu0 %vm383_vm0, %v382_v0  ;;  %v376_v2 = vld [vmem:[%s467_s1 + $0x8] sm:$0xff]   ;;  %v381_v3 = vld [vmem:[%s467_s1 + $0x18] sm:$0xff]   ;;  %vm218_vm3 = vcmask 1040384   ;;  %vm211_vm4 = vcmask 277504   ;;  %v207_v44 = vlaneseq  ;;  %vm278_vm5 = vcmask 31744  }
   0x2   :  { %371 = vmatprep.subr.bf16.mxu1 %v382_v0  ;;  %345 = vmatprep.mubr.msk.bf16.mxu1 %vm383_vm0, %v382_v0  ;;  %v377_v4 = vld [vmem:[%s467_s1 + $0x10] sm:$0xff]   ;;  %v378_v5 = vld [vmem:[%s468_s0] sm:$0xff]   ;;  %v379_v6 = vld [vmem:[%s468_s0 + $0x8] sm:$0xff]   ;;  %vm283_vm6 = vcmask 25600  }
   0x3   :  { %322 = vmatpush3.bf16.msra.mxu0 %v375_v1  ;;  %372 = vmatpush3.bf16.msra.mxu1 %v381_v3  ;;  %v380_v7 = vld [vmem:[%s468_s0 + $0x10] ss:$0 sps:$4 sm:$0x11]   ;;  %v208_v45 = vshrl.u32 %v207_v44, 7  ;;  %v205_v46 = vld [vmem:[%s467_s1 + $0x20] sm:$0x1] }
   0x4   :  { %323 = vmatprep.subr.bf16.mxu0 %v382_v0  ;;  %353 = vmatprep.subr.bf16.mxu1 %v382_v0  ;;  %v206_v47 = vunpack.c.l.bf16 %v205_v46 }
   0x5   :  { %v209_v48 = vsub.s32 0, %v208_v45 }
   0x7   :  { %324 = vmatpush3.bf16.msra.mxu0 %v376_v2  ;;  %v210_v49 = vrot.slane %v206_v47, %v209_v48 }
   0x8   :  { %325 = vmatprep.subr.bf16.mxu0 %v382_v0 }
   0xb   :  { %326 = vmatpush3.bf16.msra.mxu0 %v377_v4 }
   0xc   :  { %339 = vmatprep.subr.bf16.mxu0 %v382_v0 }
   0xe   :  { %328 = vmatmul.mubr.msk.bf16.vlgmr.msra.gmra.mrb[0].mxu0 %vm54_vm1, %v378_v5 }
   0xf   :  { %331 = vmatprep.mubr.msk.bf16.mxu0 %vm383_vm0, %v382_v0  ;;  %340 = vmatpush3.bf16.msra.mxu0 %v381_v3 }
  0x16   :  { %332 = vmatmul.mubr.msk.bf16.gmra.mrb[4].mxu0 %vm54_vm1, %v379_v6 }
  0x17   :  { %335 = vmatprep.mubr.msk.bf16.mxu0 %vm383_vm0, %v382_v0 }
  0x1e   :  { %336 = vmatmul.mubr.msk.bf16.gmra.mrb[8].mxu0 %vm54_vm1, %v380_v7 }
  0x1f   :  { %341 = vmatprep.mubr.msk.bf16.mxu0 %vm383_vm0, %v382_v0 }
  0xe1   :  { %v98_v8 = vpop.f32.mrb[0].mxu0 }
  0xe2   :  { %v329_v9 = vpop.f32.mrb[1].mxu0  ;;  %v120_v11 = vmax.f32 %v98_v8, 0.0 }
  0xe3   :  { %v101_v10 = vpop.f32.mrb[2].mxu0 }
  0xe4   :  { %v121_v12 = vmax.f32 %v101_v10, 0.0  ;;  %v330_v13 = vpop.f32.mrb[3].mxu0 }
  0xe6   :  { %v127_v14 = vpack.c.bf16 %v121_v12, %v120_v11 }
  0xe8   :  { %342 = vmatmul.mubr.msk.bf16.vlgmr.msra.gmra.mrb[12].mxu0 %vm136_vm2, %v127_v14 }
  0xe9   :  { %v106_v15 = vpop.f32.mrb[4].mxu0 }
  0xea   :  { %v333_v16 = vpop.f32.mrb[5].mxu0  ;;  %v122_v18 = vmax.f32 %v106_v15, 0.0 }
  0xeb   :  { %v109_v17 = vpop.f32.mrb[6].mxu0 }
  0xec   :  { %v123_v19 = vmax.f32 %v109_v17, 0.0  ;;  %v334_v20 = vpop.f32.mrb[7].mxu0 }
  0xee   :  { %v128_v21 = vpack.c.bf16 %v123_v19, %v122_v18 }
  0xf0   :  { %346 = vmatmul.mubr.msk.bf16.vlgmr.msra.gmra.mrb[0].mxu1 %vm136_vm2, %v128_v21 }
  0xf1   :  { %v114_v22 = vpop.f32.mrb[8].mxu0  ;;  %349 = vmatprep.mubr.msk.bf16.mxu1 %vm383_vm0, %v382_v0 }
  0xf2   :  { %v124_v23 = vmax.f32 %v114_v22, 0.0  ;;  %v337_v24 = vpop.f32.mrb[9].mxu0 }
  0xf3   :  { %v117_v25 = vpop.f32.mrb[10].mxu0 }
  0xf4   :  { %v129_v26 = vpack.c.bf16 %v124_v23, %v124_v23  ;;  %v338_v27 = vpop.f32.mrb[11].mxu0 }
  0xf8   :  { %350 = vmatmul.mubr.msk.bf16.gmra.mrb[4].mxu1 %vm136_vm2, %v129_v26 }
  0xf9   :  { %359 = vmatprep.mubr.msk.bf16.mxu1 %vm383_vm0, %v382_v0 }
 0x1bb   :  { %v180_v28 = vpop.f32.mrb[12].mxu0 }
 0x1bc   :  { %v343_v29 = vpop.f32.mrb[13].mxu0 }
 0x1bd   :  { %v183_v30 = vpop.f32.mrb[14].mxu0 }
 0x1be   :  { %v202_v31 = vpack.c.bf16 %v183_v30, %v180_v28  ;;  %v344_v32 = vpop.f32.mrb[15].mxu0 }
 0x1c0   :  { %354 = vmatpush3.bf16.msra.mxu1 %v202_v31 }
 0x1c1   :  { %355 = vmatprep.subr.bf16.mxu1 %v382_v0 }
 0x1c3   :  { %v188_v33 = vpop.f32.mrb[0].mxu1 }
 0x1c4   :  { %v347_v34 = vpop.f32.mrb[1].mxu1 }
 0x1c5   :  { %v191_v35 = vpop.f32.mrb[2].mxu1 }
 0x1c6   :  { %v203_v36 = vpack.c.bf16 %v191_v35, %v188_v33  ;;  %v348_v37 = vpop.f32.mrb[3].mxu1 }
 0x1c8   :  { %356 = vmatpush3.bf16.msra.mxu1 %v203_v36 }
 0x1c9   :  { %357 = vmatprep.subr.bf16.mxu1 %v382_v0 }
 0x1cb   :  { %v196_v38 = vpop.f32.mrb[4].mxu1 }
 0x1cc   :  { %v204_v39 = vpack.c.bf16 %v196_v38, %v196_v38  ;;  %v351_v40 = vpop.f32.mrb[5].mxu1 }
 0x1cd   :  { %v199_v41 = vpop.f32.mrb[6].mxu1 }
 0x1ce   :  { %v220_v42 = vsel %vm218_vm3, %v204_v39, 0  ;;  %v352_v43 = vpop.f32.mrb[7].mxu1 }
 0x1cf   :  { %358 = vmatpush3.bf16.msra.mxu1 %v220_v42 }
 0x1d2   :  { %360 = vmatmul.mubr.msk.bf16.vlgmr.msra.gmra.mrb[8].mxu1 %vm211_vm4, %v378_v5 }
 0x1d3   :  { %363 = vmatprep.mubr.msk.bf16.mxu1 %vm383_vm0, %v382_v0 }
 0x1da   :  { %364 = vmatmul.mubr.msk.bf16.gmra.mrb[12].mxu1 %vm211_vm4, %v379_v6 }
 0x1db   :  { %367 = vmatprep.mubr.msk.bf16.mxu1 %vm383_vm0, %v382_v0 }
 0x1e2   :  { %368 = vmatmul.mubr.msk.bf16.gmra.mrb[16].mxu1 %vm211_vm4, %v380_v7 }
 0x2a5   :  { %v256_v50 = vpop.f32.mrb[8].mxu1 }
 0x2a6   :  { %v257_v51 = vadd.f32 %v256_v50, %v210_v49  ;;  %v361_v52 = vpop.f32.mrb[9].mxu1 }
 0x2a7   :  { %v259_v53 = vpop.f32.mrb[10].mxu1 }
 0x2a8   :  { %279 = vst.msk [vmem:[%s469_s2] sm:$0xff] %vm278_vm5, %v257_v51  ;;  %v260_v54 = vadd.f32 %v259_v53, %v210_v49  ;;  %v362_v55 = vpop.f32.mrb[11].mxu1 }
 0x2aa   :  { %280 = vst.msk [vmem:[%s469_s2 + $0x8] sm:$0xff] %vm278_vm5, %v260_v54 }
 0x2ad   :  { %v264_v56 = vpop.f32.mrb[12].mxu1 }
 0x2ae   :  { %v265_v57 = vadd.f32 %v264_v56, %v210_v49  ;;  %v365_v58 = vpop.f32.mrb[13].mxu1 }
 0x2af   :  { %v267_v59 = vpop.f32.mrb[14].mxu1 }
 0x2b0   :  { %281 = vst.msk [vmem:[%s469_s2 + $0x10] sm:$0xff] %vm278_vm5, %v265_v57  ;;  %v268_v60 = vadd.f32 %v267_v59, %v210_v49  ;;  %v366_v61 = vpop.f32.mrb[15].mxu1 }
 0x2b2   :  { %282 = vst.msk [vmem:[%s469_s2 + $0x18] sm:$0xff] %vm278_vm5, %v268_v60 }
 0x2b5   :  { %v272_v62 = vpop.f32.mrb[16].mxu1 }
 0x2b6   :  { %v273_v63 = vadd.f32 %v272_v62, %v210_v49  ;;  %v369_v0 = vpop.f32.mrb[17].mxu1 }
 0x2b7   :  { %v275_v1 = vpop.f32.mrb[18].mxu1 }
 0x2b8   :  { %284 = vst.msk [vmem:[%s469_s2 + $0x20] sm:$0x3] %vm283_vm6, %v273_v63  ;;  %v370_v2 = vpop.f32.mrb[19].mxu1 }

</bundles_post_ra>
